<compile_context>
chip_gen: v7x
topology: tpu7x:2x2x1
jax: 0.10.0
libtpu: 0.0.40
codegen_flags: <defaults>
</compile_context>

<pallas_src>
import functools

import numpy as np
import jax
import jax.numpy as jnp
from jax.experimental import pallas as pl
from jax.experimental.pallas import tpu as pltpu

_LANES = 128      # every feature axis is padded to one 128-lane vreg
_SUBLANES = 8


def _round_up(a, b):
    return ((a + b - 1) // b) * b


def _doe_kernel(num_layers, dim, tile_b, batch, pdf, mm_dtype, offs,
                x_ref, y_ref, p_ref, out_ref):
    P = _LANES
    f32 = jnp.float32

    x = x_ref[...]                      # (tile_b, 128) f32, zero-padded beyond dim
    y = y_ref[...]

    def linear(a, w_off, b_off):
        w = p_ref[pl.ds(w_off, P), :]   # (128, 128) zero-padded weight block
        b = p_ref[pl.ds(b_off, 1), :]   # (1, 128)   zero-padded bias row
        return jnp.dot(a.astype(mm_dtype), w.astype(mm_dtype),
                       preferred_element_type=f32) + b

    # ---- FF(X): Linear+tanh stack, then two separate lane-dense output heads.
    h = x
    for l in range(num_layers):
        h = jnp.tanh(linear(h, offs['W'][l], offs['b'][l]))   # padded cols stay 0
    mu_x = linear(h, offs['Wmu'], offs['bmu'])                # (tile_b, 128)
    lnv_x = linear(h, offs['Wlv'], offs['blv'])               # (tile_b, 128)

    mu0 = p_ref[pl.ds(offs['mu0'], 1), :]                     # (1, 128)
    iv0 = p_ref[pl.ds(offs['iv0'], 1), :]                     # exp(-lv0), host-precomputed

    # valid-row mask (only emitted when the last tile may hold padded rows)
    needs_mask = (batch % tile_b) != 0
    if needs_mask:
        row0 = pl.program_id(0) * tile_b
        ridx = row0 + jax.lax.broadcasted_iota(jnp.int32, (tile_b, 1), 0)
        rmask = (ridx < batch).astype(f32)                    # (tile_b, 1)

    def msum(rows):                                           # rows: (tile_b, 1)
        if needs_mask:
            rows = rows * rmask
        return jnp.sum(rows)

    inv_vx = jnp.exp(-lnv_x)                                  # EUP: replaces divide
    if pdf == 'gauss':
        # fused per-row reduce: sum_d ((y-mu)^2/var + ln_var)
        sx = jnp.sum((y - mu_x) ** 2 * inv_vx + lnv_x, axis=1, keepdims=True)
        s0 = jnp.sum((y - mu0) ** 2 * iv0, axis=1, keepdims=True)
    elif pdf == 'logistic':
        # padded columns have whitened == 0 -> 2*softplus(0) = 2*ln(2) each; correct it
        pad_fix = float(2.0 * (P - dim) * np.log(2.0))

        def softplus(z):
            return jnp.maximum(z, 0.0) + jnp.log(1.0 + jnp.exp(-jnp.abs(z)))

        wx = (y - mu_x) * inv_vx
        sx = (jnp.sum(wx + 2.0 * softplus(-wx) + lnv_x, axis=1, keepdims=True)
              - pad_fix)
        w0 = (y - mu0) * iv0
        s0 = (jnp.sum(w0 + 2.0 * softplus(-w0), axis=1, keepdims=True)
              - pad_fix)
    else:
        raise ValueError('Unknown PDF: %s' % pdf)

    parts = (msum(sx), msum(s0))

    # lane-dense (8, 128) per-tile partial-sum block: scalars in sublane 0
    lane = jax.lax.broadcasted_iota(jnp.int32, (_SUBLANES, P), 1)
    sub = jax.lax.broadcasted_iota(jnp.int32, (_SUBLANES, P), 0)
    blk = jnp.where((sub == 0) & (lane == 0), parts[0], 0.0)
    blk = blk + jnp.where((sub == 0) & (lane == 1), parts[1], 0.0)
    out_ref[...] = blk.astype(f32)


def _pack_params(params, dim):
    """Pack all parameters into one (R, 128) f32, (8,128)-aligned buffer.

    Weights are zero-padded to (128, 128) so the in-kernel contraction is
    lane-dense (padded rows/cols contribute exactly zero); the output head is
    split into Wmu / Wlv here so the kernel never slices at a non-lane-aligned
    column.  The marginal exp(-ln_var) is precomputed so the kernel does not
    re-evaluate it per tile.  Returns (packed, static row offsets, total rows)."""
    P = _LANES
    blocks = []
    offsets = {'W': [], 'b': []}
    row = [0]

    def add(arr, rows_pad):
        arr = jnp.asarray(arr, jnp.float32)
        blocks.append(jnp.pad(arr, ((0, rows_pad - arr.shape[0]),
                                    (0, P - arr.shape[1]))))
        off = row[0]
        row[0] += rows_pad
        return off

    for w, b in zip(params['layers_w'], params['layers_b']):
        offsets['W'].append(add(w, P))
        offsets['b'].append(add(b.reshape(1, -1), _SUBLANES))

    wout = jnp.asarray(params['Wout'], jnp.float32)   # (hidden, 2*dim)
    bout = jnp.asarray(params['bout'], jnp.float32)   # (2*dim,)
    offsets['Wmu'] = add(wout[:, :dim], P)
    offsets['bmu'] = add(bout[:dim].reshape(1, -1), _SUBLANES)
    offsets['Wlv'] = add(wout[:, dim:], P)
    offsets['blv'] = add(bout[dim:].reshape(1, -1), _SUBLANES)
    offsets['mu0'] = add(params['mu0'], _SUBLANES)
    offsets['iv0'] = add(jnp.exp(-jnp.asarray(params['lv0'], jnp.float32)),
                         _SUBLANES)

    return jnp.concatenate(blocks, axis=0), offsets, row[0]


def doe_forward(X, Y, XY_package, params, pdf='gauss',
                mm_dtype=jnp.float32, tile_b=128):
    """Pallas implementation of DoE.forward (XY_package is unused, as in torch).

    mm_dtype: dtype of the MXU operands. Use jnp.bfloat16 on v6e/v7x (native
              bf16 MXU); elementwise / NLL math always stays f32.
    tile_b:   batch-tile rows per grid step (128 saturates v5e's MXU; 256 is a
              good choice on v6e/v7x for large batches).
    """
    del XY_package
    B, dim = Y.shape
    num_layers = len(params['layers_w'])
    hidden = params['layers_w'][0].shape[1] if num_layers else dim
    P = _LANES
    # TODO(synk): feature dims > 128 would need a feature-tiled variant; this
    # kernel keeps every operand lane-dense by padding features to 128 lanes.
    assert dim <= P and hidden <= P and 2 * dim <= P

    tile_b = max(_SUBLANES,
                 (min(tile_b, _round_up(B, _SUBLANES)) // _SUBLANES) * _SUBLANES)
    B_pad = _round_up(B, tile_b)
    num_tiles = B_pad // tile_b

    Xp = jnp.pad(X.astype(jnp.float32), ((0, B_pad - B), (0, P - dim)))
    Yp = jnp.pad(Y.astype(jnp.float32), ((0, B_pad - B), (0, P - dim)))
    packed, offs, prows = _pack_params(params, dim)

    kernel = functools.partial(_doe_kernel, num_layers, dim, tile_b, B,
                               pdf, mm_dtype, offs)

    flops = 2 * B_pad * P * P * (num_layers + 2)
    transcendentals = B_pad * P * (num_layers + (4 if pdf == 'logistic' else 1))
    bytes_accessed = 4 * (2 * B_pad * P + prows * P + num_tiles * _SUBLANES * P)

    partials = pl.pallas_call(
        kernel,
        out_shape=jax.ShapeDtypeStruct((num_tiles * _SUBLANES, P), jnp.float32),
        grid_spec=pltpu.PrefetchScalarGridSpec(
            num_scalar_prefetch=0,
            grid=(num_tiles,),
            in_specs=[
                pl.BlockSpec((tile_b, P), lambda i: (i, 0)),   # X tile
                pl.BlockSpec((tile_b, P), lambda i: (i, 0)),   # Y tile
                pl.BlockSpec((prows, P), lambda i: (0, 0)),    # packed params (pinned)
            ],
            out_specs=pl.BlockSpec((_SUBLANES, P), lambda i: (i, 0)),
        ),
        compiler_params=pltpu.CompilerParams(
            dimension_semantics=("parallel",)),
        cost_estimate=pl.CostEstimate(flops=flops,
                                      transcendentals=transcendentals,
                                      bytes_accessed=bytes_accessed),
    )(Xp, Yp, packed)

    sums = jnp.sum(partials, axis=0)        # (128,): only sublane-0 rows are nonzero
    Bf = float(B)
    log2pi = float(np.log(2.0 * np.pi))
    lv0_sum = jnp.sum(jnp.asarray(params['lv0'], jnp.float32))

    if pdf == 'gauss':
        hY_X = 0.5 * sums[0] / Bf + 0.5 * dim * log2pi
        hY = 0.5 * sums[1] / Bf + 0.5 * dim * log2pi + 0.5 * lv0_sum
    else:
        hY_X = sums[0] / Bf
        hY = sums[1] / Bf + lv0_sum

    # (mi_loss - loss).detach() + loss  ==  hY_X - hY  (forward value)
    return hY_X - hY


def _reference_forward(X, Y, params, pdf='gauss', mm_dtype=jnp.float32):
    """Pure-JAX reference mirroring the torch module (for correctness checks)."""
    f32 = jnp.float32

    def dot(a, w):
        return jnp.dot(a.astype(mm_dtype), w.astype(mm_dtype),
                       preferred_element_type=f32)

    h = X.astype(f32)
    for w, b in zip(params['layers_w'], params['layers_b']):
        h = jnp.tanh(dot(h, w) + b)
    o = dot(h, params['Wout']) + params['bout']
    dim = Y.shape[1]
    mu_x, lnv_x = o[:, :dim], o[:, dim:]

    def nlp(y, mu, lnv):
        var = jnp.exp(lnv)
        if pdf == 'gauss':
            return (0.5 * jnp.mean(jnp.sum((y - mu) ** 2 / var, axis=1))
                    + 0.5 * dim * np.log(2.0 * np.pi)
                    + 0.5 * jnp.mean(jnp.sum(lnv, axis=1)))
        whitened = (y - mu) / var
        adjust = jnp.logaddexp(jnp.zeros_like(whitened), -whitened)
        return (jnp.mean(jnp.sum(whitened, axis=1))
                + 2.0 * jnp.mean(jnp.sum(adjust, axis=1))
                + jnp.mean(jnp.sum(lnv, axis=1)))

    hY_X = nlp(Y.astype(f32), mu_x, lnv_x)
    hY = nlp(Y.astype(f32), params['mu0'], params['lv0'])
    return hY_X - hY


def init_params(key, dim, hidden, layers):
    """Deterministic synthetic parameters (FF linear stack + PDF embeddings)."""
    ks = jax.random.split(key, 2 * layers + 4)
    layers_w, layers_b = [], []
    d_in = dim
    for l in range(layers):
        w = jax.random.normal(ks[2 * l], (d_in, hidden), jnp.float32) * 0.2
        b = jax.random.normal(ks[2 * l + 1], (hidden,), jnp.float32) * 0.05
        layers_w.append(w)
        layers_b.append(b)
        d_in = hidden
    wout = jax.random.normal(ks[2 * layers], (d_in, 2 * dim), jnp.float32) * 0.2
    bout = jax.random.normal(ks[2 * layers + 1], (2 * dim,), jnp.float32) * 0.05
    mu0 = jax.random.normal(ks[2 * layers + 2], (1, dim), jnp.float32) * 0.1
    lv0 = jax.random.normal(ks[2 * layers + 3], (1, dim), jnp.float32) * 0.1
    return {'layers_w': layers_w, 'layers_b': layers_b,
            'Wout': wout, 'bout': bout, 'mu0': mu0, 'lv0': lv0}


if __name__ == "__main__":
    dim, hidden, layers = 8, 32, 2
    batch = 20          # deliberately not a tile multiple -> exercises row masking
    tile_b = 16         # 2 grid tiles

    key = jax.random.PRNGKey(0)
    kx, ky, kp = jax.random.split(key, 3)
    X = jax.random.normal(kx, (batch, dim), jnp.float32)
    Y = jax.random.normal(ky, (batch, dim), jnp.float32)
    XY_package = jnp.concatenate([X, Y], axis=1)   # unused by forward (as in torch)
    params = init_params(kp, dim, hidden, layers)

    checks = [
        ('gauss', jnp.float32, 1e-4),
        ('logistic', jnp.float32, 1e-4),
        ('gauss', jnp.bfloat16, 2e-3),    # bf16 MXU-operand path (v6e/v7x native)
    ]
    for pdf, mmdt, tol in checks:
        out = doe_forward(X, Y, XY_package, params, pdf=pdf,
                          mm_dtype=mmdt, tile_b=tile_b)
        out = jax.block_until_ready(out)
        ref = _reference_forward(X, Y, params, pdf=pdf, mm_dtype=mmdt)
        np.testing.assert_allclose(np.asarray(out), np.asarray(ref),
                                   rtol=tol, atol=tol)

    print("KERNEL_OK")
</pallas_src>

<mosaic_0001>
module attributes {stable_mosaic.version = 11 : i64} {
  func.func @_doe_kernel(%arg0: i32, %arg1: memref<16x128xf32, #tpu.memory_space<vmem>>, %arg2: memref<16x128xf32, #tpu.memory_space<vmem>>, %arg3: memref<560x128xf32, #tpu.memory_space<vmem>>, %arg4: memref<8x128xf32, #tpu.memory_space<vmem>>) attributes {dimension_semantics = [#tpu.dimension_semantics<parallel>], iteration_bounds = array<i64: 2>, scalar_prefetch = 0 : i64, scratch_operands = 0 : i64, tpu.core_type = #tpu.core_type<tc>, window_params = [{transform_indices = @transform_0, window_bounds = array<i64: 16, 128>}, {transform_indices = @transform_1, window_bounds = array<i64: 16, 128>}, {pipeline_mode = #tpu.pipeline_mode<synchronous>, transform_indices = @transform_2, window_bounds = array<i64: 560, 128>}, {transform_indices = @transform_3, window_bounds = array<i64: 8, 128>}]} {
    %c0 = arith.constant 0 : index
    %c0_0 = arith.constant 0 : index
    %0 = vector.load %arg1[%c0, %c0_0] : memref<16x128xf32, #tpu.memory_space<vmem>>, vector<16x128xf32>
    %c0_1 = arith.constant 0 : index
    %c0_2 = arith.constant 0 : index
    %1 = vector.load %arg2[%c0_1, %c0_2] : memref<16x128xf32, #tpu.memory_space<vmem>>, vector<16x128xf32>
    %c0_3 = arith.constant 0 : index
    %c0_4 = arith.constant 0 : index
    %2 = vector.load %arg3[%c0_3, %c0_4] : memref<560x128xf32, #tpu.memory_space<vmem>>, vector<128x128xf32>
    %c128 = arith.constant 128 : index
    %c0_5 = arith.constant 0 : index
    %3 = vector.load %arg3[%c128, %c0_5] : memref<560x128xf32, #tpu.memory_space<vmem>>, vector<1x128xf32>
    %cst = arith.constant dense<0.000000e+00> : vector<16x128xf32>
    %4 = tpu.matmul %0, %2, %cst {dimension_numbers = #tpu.dot_dimension_numbers<[1], [0], [0], [1], [0, 0, 1, 1], [], []>} : vector<16x128xf32>, vector<128x128xf32>, vector<16x128xf32> -> vector<16x128xf32>
    %5 = vector.broadcast %3 : vector<1x128xf32> to vector<16x128xf32>
    %6 = arith.addf %4, %5 : vector<16x128xf32>
    %7 = math.tanh %6 : vector<16x128xf32>
    %c136 = arith.constant 136 : index
    %c0_6 = arith.constant 0 : index
    %8 = vector.load %arg3[%c136, %c0_6] : memref<560x128xf32, #tpu.memory_space<vmem>>, vector<128x128xf32>
    %c264 = arith.constant 264 : index
    %c0_7 = arith.constant 0 : index
    %9 = vector.load %arg3[%c264, %c0_7] : memref<560x128xf32, #tpu.memory_space<vmem>>, vector<1x128xf32>
    %cst_8 = arith.constant dense<0.000000e+00> : vector<16x128xf32>
    %10 = tpu.matmul %7, %8, %cst_8 {dimension_numbers = #tpu.dot_dimension_numbers<[1], [0], [0], [1], [0, 0, 1, 1], [], []>} : vector<16x128xf32>, vector<128x128xf32>, vector<16x128xf32> -> vector<16x128xf32>
    %11 = vector.broadcast %9 : vector<1x128xf32> to vector<16x128xf32>
    %12 = arith.addf %10, %11 : vector<16x128xf32>
    %13 = math.tanh %12 : vector<16x128xf32>
    %c272 = arith.constant 272 : index
    %c0_9 = arith.constant 0 : index
    %14 = vector.load %arg3[%c272, %c0_9] : memref<560x128xf32, #tpu.memory_space<vmem>>, vector<128x128xf32>
    %c400 = arith.constant 400 : index
    %c0_10 = arith.constant 0 : index
    %15 = vector.load %arg3[%c400, %c0_10] : memref<560x128xf32, #tpu.memory_space<vmem>>, vector<1x128xf32>
    %cst_11 = arith.constant dense<0.000000e+00> : vector<16x128xf32>
    %16 = tpu.matmul %13, %14, %cst_11 {dimension_numbers = #tpu.dot_dimension_numbers<[1], [0], [0], [1], [0, 0, 1, 1], [], []>} : vector<16x128xf32>, vector<128x128xf32>, vector<16x128xf32> -> vector<16x128xf32>
    %17 = vector.broadcast %15 : vector<1x128xf32> to vector<16x128xf32>
    %18 = arith.addf %16, %17 : vector<16x128xf32>
    %c408 = arith.constant 408 : index
    %c0_12 = arith.constant 0 : index
    %19 = vector.load %arg3[%c408, %c0_12] : memref<560x128xf32, #tpu.memory_space<vmem>>, vector<128x128xf32>
    %c536 = arith.constant 536 : index
    %c0_13 = arith.constant 0 : index
    %20 = vector.load %arg3[%c536, %c0_13] : memref<560x128xf32, #tpu.memory_space<vmem>>, vector<1x128xf32>
    %cst_14 = arith.constant dense<0.000000e+00> : vector<16x128xf32>
    %21 = tpu.matmul %13, %19, %cst_14 {dimension_numbers = #tpu.dot_dimension_numbers<[1], [0], [0], [1], [0, 0, 1, 1], [], []>} : vector<16x128xf32>, vector<128x128xf32>, vector<16x128xf32> -> vector<16x128xf32>
    %22 = vector.broadcast %20 : vector<1x128xf32> to vector<16x128xf32>
    %23 = arith.addf %21, %22 : vector<16x128xf32>
    %c544 = arith.constant 544 : index
    %c0_15 = arith.constant 0 : index
    %24 = vector.load %arg3[%c544, %c0_15] : memref<560x128xf32, #tpu.memory_space<vmem>>, vector<1x128xf32>
    %c552 = arith.constant 552 : index
    %c0_16 = arith.constant 0 : index
    %25 = vector.load %arg3[%c552, %c0_16] : memref<560x128xf32, #tpu.memory_space<vmem>>, vector<1x128xf32>
    %c16_i32 = arith.constant 16 : i32
    %26 = arith.muli %arg0, %c16_i32 : i32
    %27 = tpu.iota {dimensions = array<i32: 0>} : vector<16x1xi32>
    %28 = vector.broadcast %26 : i32 to vector<16x1xi32>
    %29 = arith.addi %28, %27 : vector<16x1xi32>
    %c20_i32 = arith.constant 20 : i32
    %30 = vector.broadcast %c20_i32 : i32 to vector<16x1xi32>
    %31 = arith.cmpi slt, %29, %30 : vector<16x1xi32>
    %32 = arith.extui %31 : vector<16x1xi1> to vector<16x1xi32>
    %33 = arith.sitofp %32 : vector<16x1xi32> to vector<16x1xf32>
    %cst_17 = arith.constant 0.000000e+00 : f32
    %34 = vector.broadcast %cst_17 : f32 to vector<16x128xf32>
    %35 = arith.subf %34, %23 : vector<16x128xf32>
    %36 = math.exp %35 : vector<16x128xf32>
    %37 = arith.subf %1, %18 : vector<16x128xf32>
    %38 = arith.mulf %37, %37 : vector<16x128xf32>
    %39 = arith.mulf %38, %36 : vector<16x128xf32>
    %40 = arith.addf %39, %23 : vector<16x128xf32>
    %cst_18 = arith.constant dense<0.000000e+00> : vector<16xf32>
    %41 = vector.multi_reduction <add>, %40, %cst_18 [1] : vector<16x128xf32> to vector<16xf32>
    %42 = vector.shape_cast %41 : vector<16xf32> to vector<16x1xf32>
    %43 = vector.broadcast %24 : vector<1x128xf32> to vector<16x128xf32>
    %44 = arith.subf %1, %43 : vector<16x128xf32>
    %45 = arith.mulf %44, %44 : vector<16x128xf32>
    %46 = vector.broadcast %25 : vector<1x128xf32> to vector<16x128xf32>
    %47 = arith.mulf %45, %46 : vector<16x128xf32>
    %cst_19 = arith.constant dense<0.000000e+00> : vector<16xf32>
    %48 = vector.multi_reduction <add>, %47, %cst_19 [1] : vector<16x128xf32> to vector<16xf32>
    %49 = vector.shape_cast %48 : vector<16xf32> to vector<16x1xf32>
    %50 = arith.mulf %42, %33 : vector<16x1xf32>
    %51 = vector.shape_cast %50 : vector<16x1xf32> to vector<1x16x1xf32>
    %cst_20 = arith.constant dense<0.000000e+00> : vector<1xf32>
    %52 = vector.multi_reduction <add>, %51, %cst_20 [1, 2] : vector<1x16x1xf32> to vector<1xf32>
    %53 = vector.shape_cast %52 : vector<1xf32> to vector<1x1x1xf32>
    %54 = vector.extract %53[0, 0, 0] : f32 from vector<1x1x1xf32>
    %55 = arith.mulf %49, %33 : vector<16x1xf32>
    %56 = vector.shape_cast %55 : vector<16x1xf32> to vector<1x16x1xf32>
    %cst_21 = arith.constant dense<0.000000e+00> : vector<1xf32>
    %57 = vector.multi_reduction <add>, %56, %cst_21 [1, 2] : vector<1x16x1xf32> to vector<1xf32>
    %58 = vector.shape_cast %57 : vector<1xf32> to vector<1x1x1xf32>
    %59 = vector.extract %58[0, 0, 0] : f32 from vector<1x1x1xf32>
    %60 = tpu.iota {dimensions = array<i32: 1>} : vector<8x128xi32>
    %61 = tpu.iota {dimensions = array<i32: 0>} : vector<8x128xi32>
    %c0_i32 = arith.constant 0 : i32
    %62 = vector.broadcast %c0_i32 : i32 to vector<8x128xi32>
    %63 = arith.cmpi eq, %61, %62 : vector<8x128xi32>
    %c0_i32_22 = arith.constant 0 : i32
    %64 = vector.broadcast %c0_i32_22 : i32 to vector<8x128xi32>
    %65 = arith.cmpi eq, %60, %64 : vector<8x128xi32>
    %66 = arith.andi %63, %65 : vector<8x128xi1>
    %cst_23 = arith.constant 0.000000e+00 : f32
    %67 = vector.broadcast %54 : f32 to vector<8x128xf32>
    %68 = vector.broadcast %cst_23 : f32 to vector<8x128xf32>
    %69 = arith.select %66, %67, %68 : vector<8x128xi1>, vector<8x128xf32>
    %c0_i32_24 = arith.constant 0 : i32
    %70 = vector.broadcast %c0_i32_24 : i32 to vector<8x128xi32>
    %71 = arith.cmpi eq, %61, %70 : vector<8x128xi32>
    %c1_i32 = arith.constant 1 : i32
    %72 = vector.broadcast %c1_i32 : i32 to vector<8x128xi32>
    %73 = arith.cmpi eq, %60, %72 : vector<8x128xi32>
    %74 = arith.andi %71, %73 : vector<8x128xi1>
    %cst_25 = arith.constant 0.000000e+00 : f32
    %75 = vector.broadcast %59 : f32 to vector<8x128xf32>
    %76 = vector.broadcast %cst_25 : f32 to vector<8x128xf32>
    %77 = arith.select %74, %75, %76 : vector<8x128xi1>, vector<8x128xf32>
    %78 = arith.addf %69, %77 : vector<8x128xf32>
    %c0_26 = arith.constant 0 : index
    %c0_27 = arith.constant 0 : index
    %79 = vector.load %arg4[%c0_26, %c0_27] : memref<8x128xf32, #tpu.memory_space<vmem>>, vector<8x128xf32>
    tpu.vector_store %arg4[%c0_26, %c0_27], %78 {strides = array<i32>} : memref<8x128xf32, #tpu.memory_space<vmem>>, vector<8x128xf32>,
    return
  }
  func.func @transform_0(%arg0: i32) -> (i32, i32) {
    %c0_i32 = arith.constant 0 : i32
    %c0_i32_0 = arith.constant 0 : i32
    return %arg0, %c0_i32 : i32, i32
  }
  func.func @transform_1(%arg0: i32) -> (i32, i32) {
    %c0_i32 = arith.constant 0 : i32
    %c0_i32_0 = arith.constant 0 : i32
    return %arg0, %c0_i32 : i32, i32
  }
  func.func @transform_2(%arg0: i32) -> (i32, i32) {
    %c0_i32 = arith.constant 0 : i32
    %c0_i32_0 = arith.constant 0 : i32
    %c0_i32_1 = arith.constant 0 : i32
    return %c0_i32, %c0_i32_0 : i32, i32
  }
  func.func @transform_3(%arg0: i32) -> (i32, i32) {
    %c0_i32 = arith.constant 0 : i32
    %c0_i32_0 = arith.constant 0 : i32
    return %arg0, %c0_i32 : i32, i32
  }
}

</mosaic_0001>

<bundles_post_ra>
// kernel: tpu_custom_call.1
= control target key start
LH: loop header
LB: loop body
LE: loop exit
PB: predicated region body
PF: predicated region fallthrough
CT: control target
= control target key end

     0   :  { %s1749_s0 = inlined_call_operand.hbm [shape: f32[32,128], index: 0, kind: input, shape index: {}]   ;;  %s1750_s1 = inlined_call_operand.hbm [shape: f32[32,128], index: 1, kind: input, shape index: {}]   ;;  %s1751_s2 = inlined_call_operand.hbm [shape: f32[560,128], index: 2, kind: input, shape index: {}]   ;;  %s1752_s3 = inlined_call_operand.hbm [shape: f32[16,128], index: 3, kind: output, shape index: {}]  }
   0x1   :  { %1760 = sst [smem:[#allocation13_spill]] %s1749_s0 }
   0x2   :  { %1761 = sst [smem:[#allocation14_spill]] %s1751_s2 }
   0x3   :  { %8 = vsyncpa [#allocation3], 0 }
   0x4   :  { %10 = vsyncpa [#allocation3 + $0x1], 0 }
   0x5   :  { %11 = vsyncpa [#allocation6], 0 }
   0x6   :  { %13 = vsyncpa [#allocation6 + $0x1], 0 }
   0x7   :  { %14 = vsyncpa [#allocation4], 0 }
   0x8   :  { %16 = vsyncpa [#allocation4 + $0x1], 0  ;;  %s1488_s12 = smov 0   ;;  %s1490_s13 = smov 0  }
   0x9   :  { %s1492_s14 = smov 0   ;;  %s1494_s15 = smov 0  }
   0xa LB: > { %s1509_s16 = sadd.s32 4294967295, %s1459_s15   ;;  %s846_s17 = sadd.s32 4294967294, %s1459_s15   ;;  %s1459_s15 = sphi %s1494_s15, %s1782_s15   ;;  %s1455_s14 = sphi %s1492_s14, %s1781_s14   ;;  %s1451_s13 = sphi %s1490_s13, %s1780_s13   ;;  %s1447_s12 = sphi %s1488_s12, %s1779_s12  }
   0xb   : > { %p42_p0 = scmp.ne.s32.totalorder %s1451_s13, %s1447_s12  ;;  %p1753_p1 = scmp.eq.s32.totalorder %s1509_s16, 0 }
   0xc   : > { %p119_p3 = scmp.eq.s32.totalorder %s846_s17, 1  ;;  %p847_p5 = scmp.ge.s32.totalorder %s1459_s15, 1 }
   0xd   : > { %p1518_p4 = por %p1753_p1, %p42_p0  ;;  %p126_p7 = scmp.lt.s32.totalorder %s1459_s15, 3 }
   0xe   : > { %p1523_p6 = por %p119_p3, %p42_p0  ;;  %s1461_s21 = smov [#allocation7]  }
   0xf   : > { %s1762_s18 = scalar_select %p1518_p4, 1, 0 }
  0x10   : > { %s1763_s19 = scalar_select %p1523_p6, 1, 0 }
  0x11   : > { %p1528_p8 = pnand %p847_p5, %p126_p7  ;;  %s138_s22 = sshll.u32 %s1461_s21, 4  ;;  %s1532_s22 = int_to_ptr.vmem [resolvable:$true] %s138_s22 }
  0x12   : > { %s1544_s24 = sadd.s32 1, %s1459_s15   ;;  %s29_s25 = sadd.s32 1, %s1455_s14 }
  0x13   : > { %s1764_s20 = scalar_select %p1528_p8, 1, 0 }
  0x14   : > { %p1230_p9 = pneg %p1528_p8  ;;  %s26_s26 = ssub.s32 %s1459_s15, %s1544_s24 }
  0x15   : > { %s1766_s2 = sld [smem:[#allocation14_spill]] }
  0x16   : > { %p1539_p11 = pnand %p1230_p9, %p1753_p1 }
  0x18   : > { %p1299_p13 = pneg %p1539_p11 }
  0x1b   : > { %s1297_s29 = scalar_lea.hbm %s1766_s2, 8960 }
  0x1c   : > { %p1298_p12 = scmp.ne.s32.totalorder %s1766_s2, %s1297_s29  ;;  %p1304_p5 = scmp.lt.u32.totalorder %s1297_s29, %s1766_s2 }
  0x1e   : > { %p1300_p0 = pnand %p1299_p13, %p1298_p12 }
  0x20   : > { %p1301_p3 = pneg %p1300_p0 }
  0x22   : > { %p1306_p7 = pnand %p1304_p5, %p1301_p3 }
  0x24   : > { %1309 = shalt.err (!%p1306_p7)
}
  0x25   : > { %s1310_s7 = scalar_lea.vmem %s1532_s22, 8960  ;;  %p1318_p2 = scmp.lt.s32.totalorder %s1532_s22, %s1532_s22 }
  0x26   : > { %p1311_p9 = scmp.ne.s32.totalorder %s1532_s22, %s1310_s7  ;;  %p1319_p6 = scmp.lt.s32.totalorder %s1310_s7, %s1310_s7 }
  0x28   : > { %p1313_p10 = pnand %p1311_p9, %p1299_p13  ;;  %p1320_p4 = por %p1319_p6, %p1318_p2 }
  0x2a   : > { %p1314_p1 = pneg %p1313_p10 }
  0x2c   : > { %p1321_p8 = pnand %p1320_p4, %p1314_p1 }
  0x2e   : > { %1324 = shalt.err (!%p1321_p8)
}
  0x2f   : > { %s1756_s8 = smov 128   ;;  %s1758_s9 = smov 8  }
  0x30   : > { %1233 = dma.hbm_to_vmem [thread:$0]  (!%p1539_p11), %s1766_s2, 8960, %s1532_s22, [#allocation6], %s1756_s8, %s1756_s8, %s1758_s9  }
  0x31   : > { %p27_p1 = scmp.eq.s32.totalorder %s26_s26, 0  ;;  %p36_p2 = scmp.ne.s32.totalorder %s1455_s14, %s1451_s13 }
  0x32   : > { %p37_p4 = scmp.eq.s32.totalorder %s1459_s15, 0  ;;  %p1246_p6 = scmp.lt.s32.totalorder %s1459_s15, 2 }
  0x33   : > { %s1578_s17 = scalar_select %p27_p1, %s1455_s14, %s29_s25  }
  0x34   : > { %p38_p8 = por %p37_p4, %p36_p2  ;;  %p1767_p10 = scmp.eq.s32.totalorder %s1509_s16, 1 }
  0x35   : > { %s152_s23 = sand.u32 1, %s1455_s14   ;;  %s874_s27 = sshll.u32 %s1459_s15, 8 }
  0x36   : > { %p1582_p12 = por %p1767_p10, %p36_p2  ;;  %s1588_s28 = sshll.u32 %s152_s23, 4 }
  0x37   : > { %s1769_s0 = sld [smem:[#allocation13_spill]]  ;;  %s156_s25 = scalar_lea.vmem [#allocation2], %s1588_s28 }
  0x38   : > { %s163_s26 = sshll.u32 %s156_s25, 4  ;;  %p1596_p11 = pnand %p1246_p6, %p38_p8  ;;  %s1600_s26 = int_to_ptr.vmem [resolvable:$true] %s163_s26 }
  0x39   : > { %s1605_s7 = scalar_lea.hbm %s1750_s1, %s874_s27  ;;  %s1607_s10 = scalar_lea.sflag [#allocation3], %s152_s23 }
  0x3a   : > { %p1327_p0 = pneg %p1596_p11 }
  0x3d   : > { %s1593_s22 = scalar_lea.hbm %s1769_s0, %s874_s27  ;;  %s1330_s25 = scalar_lea.hbm %s1769_s0, 512 }
  0x3e   : > { %s1325_s11 = scalar_lea.hbm %s1593_s22, 256  ;;  %p1331_p7 = scmp.lt.u32.totalorder %s1593_s22, %s1769_s0 }
  0x3f   : > { %p1326_p13 = scmp.ne.s32.totalorder %s1593_s22, %s1325_s11  ;;  %p1332_p9 = scmp.lt.u32.totalorder %s1330_s25, %s1325_s11 }
  0x40   : > { %p1334_p2 = scmp.lt.u32.totalorder %s1325_s11, %s1593_s22 }
  0x41   : > { %p1328_p3 = pnand %p1327_p0, %p1326_p13  ;;  %p1333_p1 = por %p1332_p9, %p1331_p7 }
  0x43   : > { %p1329_p5 = pneg %p1328_p3  ;;  %p1335_p4 = por %p1334_p2, %p1333_p1 }
  0x45   : > { %p1336_p6 = pnand %p1335_p4, %p1329_p5 }
  0x47   : > { %1339 = shalt.err (!%p1336_p6)
}
  0x48   : > { %s1340_s23 = scalar_lea.vmem %s1600_s26, 256  ;;  %s1464_s27 = smov [#allocation2]  }
  0x49   : > { %p1341_p8 = scmp.ne.s32.totalorder %s1600_s26, %s1340_s23  ;;  %s1345_s5 = sshll.u32 %s1464_s27, 4  ;;  %s1346_s5 = int_to_ptr.vmem [resolvable:$false] %s1345_s5 }
  0x4a   : > { %s1347_s8 = scalar_lea.vmem %s1346_s5, 512  ;;  %p1348_p3 = scmp.lt.s32.totalorder %s1600_s26, %s1346_s5 }
  0x4b   : > { %p1343_p10 = pnand %p1341_p8, %p1327_p0  ;;  %p1349_p7 = scmp.lt.s32.totalorder %s1347_s8, %s1340_s23 }
  0x4d   : > { %p1344_p13 = pneg %p1343_p10  ;;  %p1350_p9 = por %p1349_p7, %p1348_p3 }
  0x4f   : > { %p1351_p1 = pnand %p1350_p9, %p1344_p13 }
  0x51   : > { %1354 = shalt.err (!%p1351_p1)
}
  0x52   : > { %s1771_s9 = smov 8   ;;  %s1772_s6 = smov 128  }
  0x53   : > { %1237 = dma.hbm_to_vmem [thread:$0]  (!%p1596_p11), %s1593_s22, 256, %s1600_s26, %s1607_s10, %s1772_s6, %s1772_s6, %s1771_s9  }
  0x54   : > { %s177_s11 = scalar_lea.vmem [#allocation5], %s1588_s28  ;;  %s173_s30 = sand.u32 1, %s1459_s15  }
  0x55   : > { %s184_s29 = sshll.u32 %s177_s11, 4  ;;  %s1642_s25 = scalar_lea.sflag [#allocation6], %s173_s30  ;;  %s1640_s29 = int_to_ptr.vmem [resolvable:$true] %s184_s29 }
  0x56   : > { %s1355_s23 = scalar_lea.hbm %s1605_s7, 256  ;;  %s1360_s8 = scalar_lea.hbm %s1750_s1, 512 }
  0x57   : > { %p1356_p5 = scmp.ne.s32.totalorder %s1605_s7, %s1355_s23  ;;  %p1361_p6 = scmp.lt.u32.totalorder %s1605_s7, %s1750_s1 }
  0x58   : > { %p1362_p8 = scmp.lt.u32.totalorder %s1360_s8, %s1355_s23  ;;  %p1364_p13 = scmp.lt.u32.totalorder %s1355_s23, %s1605_s7 }
  0x59   : > { %p1358_p2 = pnand %p1356_p5, %p1327_p0 }
  0x5a   : > { %p1363_p10 = por %p1362_p8, %p1361_p6 }
  0x5b   : > { %p1359_p4 = pneg %p1358_p2 }
  0x5c   : > { %p1365_p3 = por %p1364_p13, %p1363_p10 }
  0x5e   : > { %p1366_p7 = pnand %p1365_p3, %p1359_p4 }
  0x60   : > { %1369 = shalt.err (!%p1366_p7)
}
  0x61   : > { %s1370_s28 = scalar_lea.vmem %s1640_s29, 256  ;;  %s1465_s22 = smov [#allocation5]  }
  0x62   : > { %p1371_p9 = scmp.ne.s32.totalorder %s1640_s29, %s1370_s28  ;;  %s1375_s26 = sshll.u32 %s1465_s22, 4  ;;  %s1376_s26 = int_to_ptr.vmem [resolvable:$false] %s1375_s26 }
  0x63   : > { %s1377_s0 = scalar_lea.vmem %s1376_s26, 512  ;;  %p1378_p2 = scmp.lt.s32.totalorder %s1640_s29, %s1376_s26 }
  0x64   : > { %p1373_p1 = pnand %p1371_p9, %p1327_p0  ;;  %p1379_p6 = scmp.lt.s32.totalorder %s1377_s0, %s1370_s28 }
  0x66   : > { %p1374_p5 = pneg %p1373_p1  ;;  %p1380_p8 = por %p1379_p6, %p1378_p2 }
  0x68   : > { %p1381_p10 = pnand %p1380_p8, %p1374_p5 }
  0x6a   : > { %1384 = shalt.err (!%p1381_p10)
}
  0x6b   : > { %1240 = dma.hbm_to_vmem [thread:$0]  (!%p1596_p11), %s1605_s7, 256, %s1640_s29, %s1642_s25, %s1772_s6, %s1772_s6, %s1771_s9  }
  0x6c   : > { %p1773_p0 = scmp.ne.s32.totalorder %s1764_s20, 0 }
  0x6d   : > { %s1674_s2 = sand.u32 (!%p1773_p0), 1, %s1451_s13   ;;  %p1774_p4 = scmp.ne.s32.totalorder (!%p1773_p0), %s1762_s18, 0 }
  0x6e   : > { %196 = sbr.rel (%p1773_p0) target bundleno = 1221 (0x4c5), region = 32  ;;  %s857_s10 = sshll.u32 (!%p1773_p0), %s1674_s2, 4 }
  0x6f   : > { %s199_s11 = scalar_lea.sflag (!%p1773_p0), [#allocation3], %s1674_s2  ;;  %s1678_s30 = scalar_lea.vmem (!%p1773_p0), [#allocation2], %s857_s10 }
  0x75   : > { %1430 = dma.done.wait (%p1774_p4), %s199_s11, 256  }
  0x76   : > { %1432 = vsyncadd (%p1774_p4), %s199_s11, 4294967040  ;;  %s207_s4 = sand.u32 1, %s1509_s16   ;;  %s1685_s7 = scalar_lea.vmem [#allocation5], %s857_s10 }
  0x77   : > { %s208_s20 = scalar_lea.sflag [#allocation6], %s207_s4 }
  0x78   : > { %1434 = dma.done.wait (%p1774_p4), %s208_s20, 256  }
  0x79   : > { %1436 = vsyncadd (%p1774_p4), %s208_s20, 4294967040  ;;  %p1775_p11 = scmp.eq.s32.totalorder %s1509_s16, 0 }
  0x7b   : > { %1438 = dma.done.wait (%p1775_p11), [#allocation6], 8960   ;;  %p1776_p13 = pmov %p1775_p11 }
  0x7c   : > { %v249_v0 = vld [vmem:[#allocation7] sm:$0xff]  ;;  %v250_v1 = vld [vmem:[#allocation7 + $0x8] sm:$0xff]  ;;  %v251_v2 = vld [vmem:[#allocation7 + $0x10] sm:$0xff]  ;;  %s865_s18 = sshll.u32 %s1509_s16, 4  ;;  %vm690_vm2 = vcmask 7168   ;;  %s860_s9 = sshll.u32 %s1674_s2, 3 }
  0x7d   : > { %1440 = vsyncadd (%p1776_p13), [#allocation6], 4294958336  ;;  %v1088_v3 = vpack.c.bf16 %v250_v1, %v249_v0  ;;  %v252_v4 = vld [vmem:[#allocation7 + $0x18] sm:$0xff]  ;;  %v253_v6 = vld [vmem:[#allocation7 + $0x20] sm:$0xff]  ;;  %s871_s29 = sshll.u32 %s1509_s16, 7  ;;  %s242_s23 = scalar_lea.vmem [#allocation8], %s860_s9 }
  0x7e   : > { %v1092_v5 = vpack.c.bf16 %v252_v4, %v251_v2  ;;  %v254_v7 = vld [vmem:[#allocation7 + $0x28] sm:$0xff]  ;;  %v255_v9 = vld [vmem:[#allocation7 + $0x30] sm:$0xff]  ;;  %v256_v10 = vld [vmem:[#allocation7 + $0x38] sm:$0xff]  ;;  %s744_s27 = sshll.u32 %s242_s23, 4  ;;  %s1705_s28 = scalar_lea.hbm %s1752_s3, %s871_s29  ;;  %s1707_s27 = int_to_ptr.vmem [resolvable:$true] %s744_s27 }
  0x7f   : > { %1089 = vmatprep.subr.bf16.mxu0 %v1088_v3  ;;  %v1096_v8 = vpack.c.bf16 %v254_v7, %v253_v6  ;;  %v245_v11 = vld [vmem:[%s1678_s30] sm:$0xff]  ;;  %v347_v12 = vld [vmem:[#allocation7 + $0x88] sm:$0xff]  ;;  %v349_v14 = vld [vmem:[#allocation7 + $0x98] sm:$0xff]  ;;  %v1100_v20 = vpack.c.bf16 %v256_v10, %v255_v9  ;;  %s731_s16 = scalar_lea.sflag [#allocation4], %s1674_s2  ;;  %s1385_s22 = scalar_lea.vmem %s1707_s27, 128 }
  0x80   : > { %1091 = vmatpush3.bf16.msra.mxu0 %v1088_v3  ;;  %980 = vmatprep.mubr.f32.mxu0 %v245_v11  ;;  %v348_v13 = vld [vmem:[#allocation7 + $0x90] sm:$0xff]  ;;  %v350_v16 = vld [vmem:[#allocation7 + $0xa0] sm:$0xff]  ;;  %v351_v18 = vld [vmem:[#allocation7 + $0xa8] sm:$0xff]  ;;  %p1386_p3 = scmp.ne.s32.totalorder %s1707_s27, %s1385_s22  ;;  %s1467_s26 = smov [#allocation8]  }
  0x81   : > { %1093 = vmatprep.subr.bf16.mxu0 %v1092_v5  ;;  %v1120_v15 = vpack.c.bf16 %v348_v13, %v347_v12  ;;  %v1124_v17 = vpack.c.bf16 %v350_v16, %v349_v14  ;;  %v352_v19 = vld [vmem:[#allocation7 + $0xb0] sm:$0xff]  ;;  %v257_v21 = vld [vmem:[#allocation7 + $0x40] sm:$0xff]  ;;  %v258_v22 = vld [vmem:[#allocation7 + $0x48] sm:$0xff]  ;;  %s1389_s0 = sshll.u32 %s1467_s26, 4  ;;  %s1390_s0 = int_to_ptr.vmem [resolvable:$false] %s1389_s0 }
  0x82   : > { %v1128_v23 = vpack.c.bf16 %v352_v19, %v351_v18  ;;  %v353_v24 = vld [vmem:[#allocation7 + $0xb8] sm:$0xff]  ;;  %v354_v25 = vld [vmem:[#allocation7 + $0xc0] sm:$0xff]  ;;  %v1104_v26 = vpack.c.bf16 %v258_v22, %v257_v21  ;;  %v259_v27 = vld [vmem:[#allocation7 + $0x50] sm:$0xff]  ;;  %p1387_p7 = pnand %p1386_p3, %p1582_p12  ;;  %s1391_s10 = scalar_lea.vmem %s1390_s0, 256 }
  0x83   : > { %1121 = vmatprep.subr.bf16.mxu1 %v1120_v15  ;;  %v260_v28 = vld [vmem:[#allocation7 + $0x58] sm:$0xff]  ;;  %v1132_v29 = vpack.c.bf16 %v354_v25, %v353_v24  ;;  %v261_v31 = vld [vmem:[#allocation7 + $0x60] sm:$0xff]  ;;  %v262_v32 = vld [vmem:[#allocation7 + $0x68] sm:$0xff]  ;;  %p1392_p1 = scmp.lt.s32.totalorder %s1707_s27, %s1390_s0  ;;  %p1393_p5 = scmp.lt.s32.totalorder %s1391_s10, %s1385_s22 }
  0x84   : > { %1095 = vmatpush3.bf16.msra.mxu0 %v1092_v5  ;;  %1123 = vmatpush3.bf16.msra.mxu1 %v1120_v15  ;;  %v1108_v30 = vpack.c.bf16 %v260_v28, %v259_v27  ;;  %v1112_v33 = vpack.c.bf16 %v262_v32, %v261_v31  ;;  %v263_v34 = vld [vmem:[#allocation7 + $0x70] sm:$0xff]  ;;  %v264_v35 = vld [vmem:[#allocation7 + $0x78] sm:$0xff]  ;;  %v355_v38 = vld [vmem:[#allocation7 + $0xc8] sm:$0xff]  ;;  %p1388_p9 = pneg %p1387_p7 }
  0x85   : > { %1097 = vmatprep.subr.bf16.mxu0 %v1096_v8  ;;  %1125 = vmatprep.subr.bf16.mxu1 %v1124_v17  ;;  %v1116_v36 = vpack.c.bf16 %v264_v35, %v263_v34  ;;  %v246_v37 = vld [vmem:[%s1678_s30 + $0x8] sm:$0xff]  ;;  %v356_v39 = vld [vmem:[#allocation7 + $0xd0] sm:$0xff]  ;;  %v358_v42 = vld [vmem:[#allocation7 + $0xe0] sm:$0xff]  ;;  %p1394_p2 = por %p1393_p5, %p1392_p1 }
  0x86   : > { %v1136_v40 = vpack.c.bf16 %v356_v39, %v355_v38  ;;  %v357_v41 = vld [vmem:[#allocation7 + $0xd8] sm:$0xff]  ;;  %v359_v44 = vld [vmem:[#allocation7 + $0xe8] sm:$0xff]  ;;  %v360_v45 = vld [vmem:[#allocation7 + $0xf0] sm:$0xff] }
  0x87   : > { %v1140_v43 = vpack.c.bf16 %v358_v42, %v357_v41  ;;  %v361_v46 = vld [vmem:[#allocation7 + $0xf8] sm:$0xff]  ;;  %v1144_v47 = vpack.c.bf16 %v360_v45, %v359_v44  ;;  %v362_v48 = vld [vmem:[#allocation7 + $0x100] sm:$0xff]  ;;  %v445_v50 = vld [vmem:[#allocation7 + $0x110] sm:$0xff]  ;;  %p1395_p6 = pnand %p1394_p2, %p1388_p9 }
  0x88   : > { %1099 = vmatpush3.bf16.msra.mxu0 %v1096_v8  ;;  %1127 = vmatpush3.bf16.msra.mxu1 %v1124_v17  ;;  %v1148_v49 = vpack.c.bf16 %v362_v48, %v361_v46  ;;  %v446_v51 = vld [vmem:[#allocation7 + $0x118] sm:$0xff]  ;;  %v542_v54 = vld [vmem:[#allocation7 + $0x1a0] sm:$0xff]  ;;  %v448_v56 = vld [vmem:[#allocation7 + $0x128] sm:$0xff] }
  0x89   : > { %1101 = vmatprep.subr.bf16.mxu0 %v1100_v20  ;;  %1129 = vmatprep.subr.bf16.mxu1 %v1128_v23  ;;  %v541_v52 = vld [vmem:[#allocation7 + $0x198] sm:$0xff]  ;;  %v1152_v53 = vpack.c.bf16 %v446_v51, %v445_v50  ;;  %v447_v55 = vld [vmem:[#allocation7 + $0x120] sm:$0xff]  ;;  %v449_v59 = vld [vmem:[#allocation7 + $0x130] sm:$0xff] }
  0x8a   : > { %v1184_v57 = vpack.c.bf16 %v542_v54, %v541_v52  ;;  %v1156_v58 = vpack.c.bf16 %v448_v56, %v447_v55  ;;  %v450_v60 = vld [vmem:[#allocation7 + $0x138] sm:$0xff]  ;;  %v451_v62 = vld [vmem:[#allocation7 + $0x140] sm:$0xff]  ;;  %v452_v63 = vld [vmem:[#allocation7 + $0x148] sm:$0xff] }
  0x8b   : > { %v1160_v61 = vpack.c.bf16 %v450_v60, %v449_v59  ;;  %v1164_v0 = vpack.c.bf16 %v452_v63, %v451_v62  ;;  %v861_v1 = vld [vmem:[#allocation7 + $0x80] ss:$0 sm:$0xff]  ;;  %v543_v6 = vld [vmem:[#allocation7 + $0x1a8] sm:$0xff]  ;;  %v544_v7 = vld [vmem:[#allocation7 + $0x1b0] sm:$0xff] }
  0x8c   : > { %1103 = vmatpush3.bf16.msra.mxu0 %v1100_v20  ;;  %1131 = vmatpush3.bf16.msra.mxu1 %v1128_v23  ;;  %v1188_v9 = vpack.c.bf16 %v544_v7, %v543_v6  ;;  %v545_v11 = vld [vmem:[#allocation7 + $0x1b8] sm:$0xff]  ;;  %v546_v12 = vld [vmem:[#allocation7 + $0x1c0] sm:$0xff]  ;;  %v547_v14 = vld [vmem:[#allocation7 + $0x1c8] sm:$0xff] }
  0x8d   : > { %1105 = vmatprep.subr.bf16.mxu0 %v1104_v26  ;;  %1133 = vmatprep.subr.bf16.mxu1 %v1132_v29  ;;  %v1192_v13 = vpack.c.bf16 %v546_v12, %v545_v11  ;;  %v548_v15 = vld [vmem:[#allocation7 + $0x1d0] sm:$0xff]  ;;  %v454_v18 = vld [vmem:[#allocation7 + $0x158] sm:$0xff]  ;;  %v550_v21 = vld [vmem:[#allocation7 + $0x1e0] sm:$0xff]  ;;  %v643_v12 = vstv %s865_s18 }
  0x8e   : > { %v1196_v16 = vpack.c.bf16 %v548_v15, %v547_v14  ;;  %v453_v17 = vld [vmem:[#allocation7 + $0x150] sm:$0xff]  ;;  %v549_v19 = vld [vmem:[#allocation7 + $0x1d8] sm:$0xff]  ;;  %v455_v23 = vld [vmem:[#allocation7 + $0x160] sm:$0xff] }
  0x8f   : > { %v1168_v20 = vpack.c.bf16 %v454_v18, %v453_v17  ;;  %v1200_v22 = vpack.c.bf16 %v550_v21, %v549_v19  ;;  %v456_v24 = vld [vmem:[#allocation7 + $0x168] sm:$0xff]  ;;  %v552_v27 = vld [vmem:[#allocation7 + $0x1f0] sm:$0xff]  ;;  %v553_v31 = vld [vmem:[#allocation7 + $0x1f8] sm:$0xff] }
  0x90   : > { %1107 = vmatpush3.bf16.msra.mxu0 %v1104_v26  ;;  %1135 = vmatpush3.bf16.msra.mxu1 %v1132_v29  ;;  %v551_v25 = vld [vmem:[#allocation7 + $0x1e8] sm:$0xff]  ;;  %v1172_v26 = vpack.c.bf16 %v456_v24, %v455_v23  ;;  %v457_v29 = vld [vmem:[#allocation7 + $0x170] sm:$0xff]  ;;  %v459_v34 = vld [vmem:[#allocation7 + $0x180] sm:$0xff]  ;;  %v1466_v24 = vmov 0.0  }
  0x91   : > { %1109 = vmatprep.subr.bf16.mxu0 %v1108_v30  ;;  %1137 = vmatprep.subr.bf16.mxu1 %v1136_v40  ;;  %v1204_v28 = vpack.c.bf16 %v552_v27, %v551_v25  ;;  %v460_v35 = vld [vmem:[#allocation7 + $0x188] sm:$0xff]  ;;  %v556_v39 = vld [vmem:[#allocation7 + $0x210] sm:$0xff] }
  0x92   : > { %v555_v38 = vld [vmem:[#allocation7 + $0x208] sm:$0xff]  ;;  %v247_v48 = vld [vmem:[%s1685_s7] sm:$0xff] }
  0x93   : > { %v862_v41 = vld [vmem:[#allocation7 + $0x108] ss:$0 sm:$0xff] }
  0x94   : > { %1111 = vmatpush3.bf16.msra.mxu0 %v1108_v30  ;;  %1139 = vmatpush3.bf16.msra.mxu1 %v1136_v40  ;;  %v458_v30 = vld [vmem:[#allocation7 + $0x178] sm:$0xff]  ;;  %v1212_v40 = vpack.c.bf16 %v556_v39, %v555_v38  ;;  %v869_v52 = vld [vmem:[#allocation7 + $0x228] ss:$0 sm:$0xff] }
  0x95   : > { %1113 = vmatprep.subr.bf16.mxu0 %v1112_v33  ;;  %1141 = vmatprep.subr.bf16.mxu1 %v1140_v43  ;;  %v1176_v32 = vpack.c.bf16 %v458_v30, %v457_v29  ;;  %v248_v50 = vld [vmem:[%s1685_s7 + $0x8] sm:$0xff] }
  0x98   : > { %1115 = vmatpush3.bf16.msra.mxu0 %v1112_v33  ;;  %1143 = vmatpush3.bf16.msra.mxu1 %v1140_v43  ;;  %v554_v33 = vld [vmem:[#allocation7 + $0x200] sm:$0xff] }
  0x99   : > { %1117 = vmatprep.subr.bf16.mxu0 %v1116_v36  ;;  %1145 = vmatprep.subr.bf16.mxu1 %v1144_v47 }
  0x9c   : > { %1119 = vmatpush3.bf16.msra.mxu0 %v1116_v36  ;;  %1147 = vmatpush3.bf16.msra.mxu1 %v1144_v47  ;;  %v1208_v36 = vpack.c.bf16 %v554_v33, %v553_v31 }
  0x9d   : > { %1149 = vmatprep.subr.bf16.mxu1 %v1148_v49  ;;  %1153 = vmatprep.subr.bf16.mxu0 %v1152_v53 }
  0x9f   : > { %981 = vmatmul.mubr.f32.vlgmr.msra.gmra.mrb[0].mxu0 %v246_v37  ;;  %v1180_v37 = vpack.c.bf16 %v460_v35, %v459_v34 }
  0xa0   : > { %1151 = vmatpush3.bf16.msra.mxu1 %v1148_v49  ;;  %1155 = vmatpush3.bf16.msra.mxu0 %v1152_v53  ;;  %v868_v49 = vld [vmem:[#allocation7 + $0x220] ss:$0 sm:$0xff] }
  0xa1   : > { %1185 = vmatprep.subr.bf16.mxu1 %v1184_v57  ;;  %1157 = vmatprep.subr.bf16.mxu0 %v1156_v58  ;;  %v674_v51 = vsub.f32 %v247_v48, %v868_v49  ;;  %v675_v53 = vsub.f32 %v248_v50, %v868_v49 }
  0xa3   : > { %v676_v54 = vmul.f32 %v674_v51, %v674_v51  ;;  %v677_v55 = vmul.f32 %v675_v53, %v675_v53 }
  0xa4   : > { %1159 = vmatpush3.bf16.msra.mxu0 %v1156_v58  ;;  %v864_v58 = vld [vmem:[#allocation7 + $0x218] ss:$0 sm:$0xff] }
  0xa5   : > { %1161 = vmatprep.subr.bf16.mxu0 %v1160_v61  ;;  %v682_v56 = vmul.f32 %v869_v52, %v676_v54 }
  0xa7   : > { %684 = vadd.xlane.f32.xlu1 %v682_v56 }
  0xa8   : > { %1163 = vmatpush3.bf16.msra.mxu0 %v1160_v61 }
  0xa9   : > { %1165 = vmatprep.subr.bf16.mxu0 %v1164_v0 }
  0xac   : > { %1167 = vmatpush3.bf16.msra.mxu0 %v1164_v0 }
  0xad   : > { %1169 = vmatprep.subr.bf16.mxu0 %v1168_v20 }
  0xb0   : > { %1171 = vmatpush3.bf16.msra.mxu0 %v1168_v20 }
  0xb1   : > { %1173 = vmatprep.subr.bf16.mxu0 %v1172_v26 }
  0xb4   : > { %1175 = vmatpush3.bf16.msra.mxu0 %v1172_v26 }
  0xb5   : > { %1177 = vmatprep.subr.bf16.mxu0 %v1176_v32 }
  0xb8   : > { %1179 = vmatpush3.bf16.msra.mxu0 %v1176_v32 }
  0xb9   : > { %1181 = vmatprep.subr.bf16.mxu0 %v1180_v37 }
  0xbc   : > { %1183 = vmatpush3.bf16.msra.mxu0 %v1180_v37 }
 0x134   : > { %v685_v26 = vpop.xlane.xlu1 %684 }
 0x172   : > { %v982_v2 = vpop.f32.mrb[0].mxu0 }
 0x173   : > { %v342_v3 = vadd.f32 %v982_v2, %v861_v1  ;;  %v336_v4 = vpop.f32.mrb[1].mxu0 }
 0x174   : > { %v337_v5 = vadd.f32 %v861_v1, %v336_v4 }
 0x176   : > { %1285 = vtanh.f32 %v337_v5 }
 0x177   : > { %1287 = vtanh.f32 %v342_v3  ;;  %v863_v3 = vld [vmem:[#allocation7 + $0x190] ss:$0 sm:$0xff] }
 0x180   : > { %v1286_v8 = vpop.eup %1285 }
 0x181   : > { %v1288_v10 = vpop.eup %1287  ;;  %1015 = vmatprep.mubr.f32.mxu1 %v1286_v8  ;;  %v640_v8 = vlaneseq }
 0x182   : > { %1016 = vmatmul.mubr.f32.vlgmr.msra.gmra.mrb[0].mxu1 %v1288_v10 }
 0x183   : > { %1187 = vmatpush3.bf16.msra.mxu1 %v1184_v57  ;;  %v683_v57 = vmul.f32 %v869_v52, %v677_v55  ;;  %v641_v11 = vshrl.u32 %v640_v8, 7  ;;  %v718_v55 = vand.u32 127, %v640_v8 }
 0x184   : > { %1189 = vmatprep.subr.bf16.mxu1 %v1188_v9 }
 0x185   : > { %686 = vadd.xlane.f32.xlu1 %v683_v57  ;;  %v642_v17 = vadd.s32 8, %v641_v11  ;;  %vm719_vm3 = vcmp.eq.s32.totalorder %v641_v11, 0  ;;  %vm720_vm4 = vcmp.eq.s32.totalorder %v718_v55, 0  ;;  %vm724_vm5 = vcmp.eq.s32.totalorder %v718_v55, 1 }
 0x186   : > { %vm721_vm6 = vmand %vm719_vm3, %vm720_vm4 }
 0x187   : > { %1191 = vmatpush3.bf16.msra.mxu1 %v1188_v9  ;;  %v645_v23 = vadd.s32 %v643_v12, %v642_v17  ;;  %vm725_vm7 = vmand %vm719_vm3, %vm724_vm5 }
 0x188   : > { %1193 = vmatprep.subr.bf16.mxu1 %v1192_v13 }
 0x189   : > { %vm647_vm1 = vcmp.lt.s32.totalorder %v645_v23, 20 }
 0x18b   : > { %1195 = vmatpush3.bf16.msra.mxu1 %v1192_v13 }
 0x18c   : > { %1197 = vmatprep.subr.bf16.mxu1 %v1196_v16 }
 0x18f   : > { %1199 = vmatpush3.bf16.msra.mxu1 %v1196_v16  ;;  %v644_v16 = vadd.s32 %v643_v12, %v641_v11 }
 0x190   : > { %1201 = vmatprep.subr.bf16.mxu1 %v1200_v22 }
 0x191   : > { %vm646_vm0 = vcmp.lt.s32.totalorder %v644_v16, 20 }
 0x192   : > { %v866_v25 = vsel %vm646_vm0, 1.0, %v1466_v24 }
 0x193   : > { %1203 = vmatpush3.bf16.msra.mxu1 %v1200_v22  ;;  %v703_v27 = vmul.f32 %v866_v25, %v685_v26 }
 0x194   : > { %1205 = vmatprep.subr.bf16.mxu1 %v1204_v28 }
 0x195   : > { %v705_v31 = vsel %vm690_vm2, %v703_v27, 0.0 }
 0x197   : > { %1207 = vmatpush3.bf16.msra.mxu1 %v1204_v28  ;;  %v867_v28 = vsel %vm647_vm1, 1.0, %v1466_v24 }
 0x198   : > { %1209 = vmatprep.subr.bf16.mxu1 %v1208_v36 }
 0x19b   : > { %1211 = vmatpush3.bf16.msra.mxu1 %v1208_v36 }
 0x19c   : > { %1213 = vmatprep.subr.bf16.mxu1 %v1212_v40 }
 0x19f   : > { %1215 = vmatpush3.bf16.msra.mxu1 %v1212_v40 }
 0x212   : > { %v687_v29 = vpop.xlane.xlu1 %686 }
 0x213   : > { %v704_v30 = vmul.f32 %v867_v28, %v687_v29 }
 0x215   : > { %v706_v32 = vsel %vm690_vm2, %v704_v30, 0.0 }
 0x216   : > { %v707_v33 = vadd.f32 %v706_v32, %v705_v31 }
 0x218   : > { %708 = vadd.xlane.f32.xlu1 %v707_v33 }
 0x255   : > { %v1017_v42 = vpop.f32.mrb[0].mxu1 }
 0x256   : > { %v440_v43 = vadd.f32 %v1017_v42, %v862_v41  ;;  %v434_v44 = vpop.f32.mrb[1].mxu1 }
 0x257   : > { %v435_v45 = vadd.f32 %v862_v41, %v434_v44 }
 0x259   : > { %1289 = vtanh.f32 %v435_v45 }
 0x25a   : > { %1291 = vtanh.f32 %v440_v43 }
 0x263   : > { %v1290_v46 = vpop.eup %1289 }
 0x264   : > { %v1292_v47 = vpop.eup %1291  ;;  %1050 = vmatprep.mubr.f32.mxu0 %v1290_v46  ;;  %1085 = vmatprep.mubr.f32.mxu1 %v1290_v46 }
 0x265   : > { %1051 = vmatmul.mubr.f32.vlgmr.msra.gmra.mrb[2].mxu0 %v1292_v47  ;;  %1086 = vmatmul.mubr.f32.vlgmr.msra.gmra.mrb[2].mxu1 %v1292_v47 }
 0x2a5   : > { %v709_v41 = vpop.xlane.xlu1 %708 }
 0x2a6   : > { %v710_v42 = vrot.slane %v709_v41, 4 }
 0x2a8   : > { %v711_v43 = vadd.f32 %v710_v42, %v709_v41 }
 0x2aa   : > { %v712_v44 = vrot.slane %v711_v43, 2 }
 0x338   : > { %v1052_v59 = vpop.f32.mrb[2].mxu0  ;;  %v1087_v60 = vpop.f32.mrb[2].mxu1 }
 0x339   : > { %v634_v61 = vadd.f32 %v1087_v60, %v864_v58  ;;  %v532_v62 = vpop.f32.mrb[3].mxu0  ;;  %v628_v63 = vpop.f32.mrb[3].mxu1  ;;  %v538_v6 = vadd.f32 %v1052_v59, %v863_v3 }
 0x33a   : > { %v629_v0 = vadd.f32 %v864_v58, %v628_v63  ;;  %v533_v7 = vadd.f32 %v863_v3, %v532_v62 }
 0x33b   : > { %v653_v1 = vsub.f32 0.0, %v634_v61  ;;  %v659_v9 = vsub.f32 %v248_v50, %v538_v6 }
 0x33c   : > { %v652_v2 = vsub.f32 0.0, %v629_v0  ;;  %v658_v10 = vsub.f32 %v247_v48, %v533_v7  ;;  %v713_v48 = vadd.f32 %v712_v44, %v711_v43 }
 0x33d   : > { %v656_v4 = vmul.f32 1.442695, %v653_v1  ;;  %v661_v13 = vmul.f32 %v659_v9, %v659_v9 }
 0x33e   : > { %v654_v5 = vmul.f32 1.442695, %v652_v2  ;;  %v660_v15 = vmul.f32 %v658_v10, %v658_v10  ;;  %v714_v51 = vrot.slane %v713_v48, 1 }
 0x33f   : > { %1293 = vpow2.f32 %v656_v4 }
 0x340   : > { %1295 = vpow2.f32 %v654_v5  ;;  %v715_v54 = vadd.f32 %v714_v51, %v713_v48 }
 0x349   : > { %v1294_v14 = vpop.eup %1293 }
 0x34a   : > { %v1296_v18 = vpop.eup %1295  ;;  %v663_v19 = vmul.f32 %v1294_v14, %v661_v13 }
 0x34b   : > { %v662_v20 = vmul.f32 %v1296_v18, %v660_v15 }
 0x34c   : > { %v665_v21 = vadd.f32 %v663_v19, %v634_v61 }
 0x34d   : > { %v664_v22 = vadd.f32 %v662_v20, %v629_v0 }
 0x34f   : > { %666 = vadd.xlane.f32.xlu0 %v664_v22 }
 0x353   : > { %668 = vadd.xlane.f32.xlu0 %v665_v21 }
 0x3dc   : > { %v667_v34 = vpop.xlane.xlu0 %666 }
 0x3dd   : > { %v688_v35 = vmul.f32 %v866_v25, %v667_v34 }
 0x3df   : > { %v691_v38 = vsel %vm690_vm2, %v688_v35, 0.0 }
 0x3e0   : > { %v669_v36 = vpop.xlane.xlu0 %668 }
 0x3e1   : > { %v689_v37 = vmul.f32 %v867_v28, %v669_v36 }
 0x3e3   : > { %v692_v39 = vsel %vm690_vm2, %v689_v37, 0.0 }
 0x3e4   : > { %v693_v40 = vadd.f32 %v692_v39, %v691_v38 }
 0x3e6   : > { %694 = vadd.xlane.f32.xlu0 %v693_v40 }
 0x473   : > { %v695_v45 = vpop.xlane.xlu0 %694 }
 0x474   : > { %v696_v46 = vrot.slane %v695_v45, 4 }
 0x476   : > { %v697_v47 = vadd.f32 %v696_v46, %v695_v45 }
 0x478   : > { %v698_v49 = vrot.slane %v697_v47, 2 }
 0x47a   : > { %v699_v50 = vadd.f32 %v698_v49, %v697_v47 }
 0x47c   : > { %v700_v52 = vrot.slane %v699_v50, 1 }
 0x47e   : > { %v701_v53 = vadd.f32 %v700_v52, %v699_v50 }
 0x480   : > { %1216 = vpush %v701_v53 }
 0x481   : > { %1218 = vpush %v715_v54 }
 0x4b1   : > { %s1217_s6 = spop %1216 }
 0x4b2   : > { %v722_v56 = vstv %s1217_s6  ;;  %s1219_s25 = spop %1218 }
 0x4b3   : > { %v723_v57 = vsel %vm721_vm6, %v722_v56, 0.0  ;;  %v726_v58 = vstv %s1219_s25 }
 0x4b4   : > { %v727_v59 = vsel %vm725_vm7, %v726_v58, 0.0 }
 0x4b5   : > { %v728_v60 = vadd.f32 %v727_v59, %v723_v57 }
 0x4b7   : > { %729 = vst [vmem:[%s242_s23] sm:$0xff] %v728_v60 }
 0x4b8   : > { %1398 = shalt.err (!%p1395_p6)
}
 0x4b9   : > { %s1399_s2 = scalar_lea.hbm %s1705_s28, 128  ;;  %s1403_s4 = scalar_lea.hbm %s1752_s3, 256 }
 0x4ba   : > { %p1400_p8 = scmp.ne.s32.totalorder %s1705_s28, %s1399_s2  ;;  %p1404_p4 = scmp.lt.u32.totalorder %s1705_s28, %s1752_s3 }
 0x4bb   : > { %p1405_p11 = scmp.lt.u32.totalorder %s1403_s4, %s1399_s2  ;;  %p1407_p3 = scmp.lt.u32.totalorder %s1399_s2, %s1705_s28 }
 0x4bc   : > { %p1401_p10 = pnand %p1400_p8, %p1582_p12 }
 0x4bd   : > { %p1406_p13 = por %p1405_p11, %p1404_p4 }
 0x4be   : > { %p1402_p0 = pneg %p1401_p10 }
 0x4bf   : > { %p1408_p7 = por %p1407_p3, %p1406_p13 }
 0x4c1   : > { %p1409_p9 = pnand %p1408_p7, %p1402_p0 }
 0x4c3   : > { %1412 = shalt.err (!%p1409_p9)
}
 0x4c4   : > { %1228 = dma.vmem_to_hbm [thread:$0]  (%p1582_p12), %s1707_s27, 128, %s1705_s28, %s731_s16  }
 0x4c5 PF: > { %s756_s18 = sand.u32 1, %s1447_s12   ;;  %p1777_p1 = scmp.ne.s32.totalorder %s1763_s19, 0 }
 0x4c6   : > { %p1778_p5 = scmp.ge.s32.totalorder %s1459_s15, 2  ;;  %s757_s9 = scalar_lea.sflag [#allocation4], %s756_s18 }
 0x4c8   : > { %p1242_p2 = pnand %p1778_p5, %p1777_p1 }
 0x4ca   : > { %1442 = dma.done.wait (!%p1242_p2), %s757_s9, 128  }
 0x4cb   : > { %1444 = vsyncadd (!%p1242_p2), %s757_s9, 4294967168  ;;  %p19_p6 = scmp.ge.s32.totalorder %s1544_s24, 4   ;;  %s1779_s12 = smov %s1451_s13 }
 0x4cc   : > { %s1780_s13 = smov %s1455_s14  ;;  %s1781_s14 = smov %s1578_s17 }
 0x4cd   : > { %s1782_s15 = smov %s1544_s24  ;;  %21 = sbr.rel (!%p19_p6) target bundleno = 10 (0xa), region = 94 }
 0x4d4   :  { %762 = vsyncpa [#allocation3], 1 }
 0x4d5   :  { %764 = vsyncpa [#allocation3 + $0x1], 1 }
 0x4d6   :  { %765 = vsyncpa [#allocation6], 1 }
 0x4d7   :  { %767 = vsyncpa [#allocation6 + $0x1], 1 }
 0x4d8   :  { %768 = vsyncpa [#allocation4], 1 }
 0x4d9   :  { %770 = vsyncpa [#allocation4 + $0x1], 1 }

</bundles_post_ra>
